<compile_context>
chip_gen: v5e
topology: v5e:2x2
jax: 0.10.0
libtpu: 0.0.40
codegen_flags: <defaults>
</compile_context>

<pallas_src>
import functools

import jax
import jax.numpy as jnp
from jax.experimental import pallas as pl
from jax.experimental.pallas import tpu as pltpu

HIDDEN = 256


def _round_up(x, m):
    return ((x + m - 1) // m) * m


def _critic_kernel(x_ref, a_ref, w1o_ref, w1a_ref, w2_ref, w3_ref, c_ref, o_ref):
    c = c_ref[...]                                    # (5, 256) f32: b1,b2,b3,wq,[bq,0..]
    x_bf = x_ref[...].astype(jnp.bfloat16)            # (TB, obs_dim)
    a_bf = a_ref[...].astype(jnp.bfloat16)            # (TB, act_dim)

    # fc1 with the concat fused: x @ W1_obs + a @ (W1_act / max_action) + b1
    h = (jnp.dot(x_bf, w1o_ref[...], preferred_element_type=jnp.float32)
         + jnp.dot(a_bf, w1a_ref[...], preferred_element_type=jnp.float32)
         + c[0:1, :])
    h = jnp.maximum(h, 0.0)

    # fc2 + ReLU (bf16 MXU matmul, f32 accumulate, f32 bias/ReLU -> v5e friendly)
    h = jnp.dot(h.astype(jnp.bfloat16), w2_ref[...],
                preferred_element_type=jnp.float32) + c[1:2, :]
    h = jnp.maximum(h, 0.0)

    # fc3 + ReLU
    h = jnp.dot(h.astype(jnp.bfloat16), w3_ref[...],
                preferred_element_type=jnp.float32) + c[2:3, :]
    h = jnp.maximum(h, 0.0)

    # q head as wq (1,256) contracted against h (tb,256) on its feature dim
    # -> lane-dense (1, tb) row on the MXU (which has slack here); avoids the
    # sublane->lane relayout and the masked width-1 column store entirely.
    q_row = jax.lax.dot_general(
        c[3:4, :], h,
        dimension_numbers=(((1,), (1,)), ((), ())),
        preferred_element_type=jnp.float32) + c[4:5, 0:1]          # (1, tb)

    o_ref[...] = q_row[None].astype(o_ref.dtype)                   # (1, 1, tb)


def pack_critic_params(raw, obs_dim, max_action):
    """raw = [(w1,b1),(w2,b2),(w3,b3),(wq,bq)], weights stored (in_features, out_features)."""
    (w1, b1), (w2, b2), (w3, b3), (wq, bq) = raw
    consts = jnp.zeros((5, HIDDEN), jnp.float32)
    consts = consts.at[0, :].set(b1.astype(jnp.float32))
    consts = consts.at[1, :].set(b2.astype(jnp.float32))
    consts = consts.at[2, :].set(b3.astype(jnp.float32))
    consts = consts.at[3, :].set(wq.reshape(HIDDEN).astype(jnp.float32))
    consts = consts.at[4, 0].set(jnp.asarray(bq, jnp.float32).reshape(()))
    return dict(
        w1_obs=w1[:obs_dim, :].astype(jnp.bfloat16),
        # fold 1/max_action into the action half of fc1's weight (done once here)
        w1_act=(w1[obs_dim:, :] / max_action).astype(jnp.bfloat16),
        w2=w2.astype(jnp.bfloat16),
        w3=w3.astype(jnp.bfloat16),
        consts=consts,                                             # (5, 256) f32
    )


@functools.partial(jax.jit, static_argnames=("tb",))
def critic_forward(x, actions, params, tb=None):
    """x: (B, obs_dim), actions: (B, act_dim) -> q: (B, 1) float32.

    If tb is given explicitly it must be a multiple of 8 (or equal to B).
    """
    B, obs_dim = x.shape
    act_dim = actions.shape[1]

    if tb is None:
        if B <= 16:
            # tiny latency case: one tile (splitting < 16 rows is pointless).
            tb = B
        else:
            # >= 2 tiles so v7x's second TensorCore gets work via the parallel
            # grid axis; 1024-row cap (big tiles amortize ~0.35us/step overhead
            # and easily fit even v7x's 64 MiB VMEM); 128-aligned for MXU / v5e.
            align = 128 if B >= 256 else 8
            tb = min(1024, _round_up(-(-B // 2), align))
    nb = pl.cdiv(B, tb)

    const2 = lambda i: (0, 0)   # weights / consts: same block every step (VMEM-resident)

    rows = nb * tb
    flops = 2 * rows * ((obs_dim + act_dim) * HIDDEN + 2 * HIDDEN * HIDDEN + HIDDEN)
    bytes_accessed = (
        rows * (obs_dim + act_dim + 1) * 4                              # activations in/out
        + ((obs_dim + act_dim) * HIDDEN + 2 * HIDDEN * HIDDEN) * 2      # bf16 weights
        + 5 * HIDDEN * 4)                                               # packed consts

    # Deeper input pipeline only when the grid is long enough to use it.
    if nb >= 3:
        x_spec = pl.BlockSpec((tb, obs_dim), lambda i: (i, 0),
                              pipeline_mode=pl.Buffered(3))
        a_spec = pl.BlockSpec((tb, act_dim), lambda i: (i, 0),
                              pipeline_mode=pl.Buffered(3))
    else:
        x_spec = pl.BlockSpec((tb, obs_dim), lambda i: (i, 0))
        a_spec = pl.BlockSpec((tb, act_dim), lambda i: (i, 0))

    q3 = pl.pallas_call(
        _critic_kernel,
        out_shape=jax.ShapeDtypeStruct((nb, 1, tb), jnp.float32),
        grid=(nb,),
        in_specs=[
            x_spec,                                                  # x tile
            a_spec,                                                  # actions tile
            pl.BlockSpec((obs_dim, HIDDEN), const2),                 # w1_obs (bf16)
            pl.BlockSpec((act_dim, HIDDEN), const2),                 # w1_act (bf16)
            pl.BlockSpec((HIDDEN, HIDDEN), const2),                  # w2 (bf16)
            pl.BlockSpec((HIDDEN, HIDDEN), const2),                  # w3 (bf16)
            pl.BlockSpec((5, HIDDEN), const2),                       # b1/b2/b3/wq/bq packed
        ],
        out_specs=pl.BlockSpec((1, 1, tb), lambda i: (i, 0, 0)),     # lane-dense q rows
        compiler_params=pltpu.CompilerParams(
            dimension_semantics=("parallel",)),
        cost_estimate=pl.CostEstimate(
            flops=flops, transcendentals=0, bytes_accessed=bytes_accessed),
    )(x, actions, params["w1_obs"], params["w1_act"], params["w2"],
      params["w3"], params["consts"])

    # (nb, 1, tb) -> (B, 1); the ragged tail rows (if any) are garbage and dropped.
    return q3.reshape(nb * tb)[:B].reshape(B, 1)


def critic_reference_packed(x, actions, p):
    """Plain-JAX mirror of the kernel arithmetic (bf16 weights, f32 accumulate)."""
    c = p["consts"]
    h = (jnp.dot(x.astype(jnp.bfloat16), p["w1_obs"],
                 preferred_element_type=jnp.float32)
         + jnp.dot(actions.astype(jnp.bfloat16), p["w1_act"],
                   preferred_element_type=jnp.float32)
         + c[0:1, :])
    h = jnp.maximum(h, 0.0)
    h = jnp.dot(h.astype(jnp.bfloat16), p["w2"],
                preferred_element_type=jnp.float32) + c[1:2, :]
    h = jnp.maximum(h, 0.0)
    h = jnp.dot(h.astype(jnp.bfloat16), p["w3"],
                preferred_element_type=jnp.float32) + c[2:3, :]
    h = jnp.maximum(h, 0.0)
    return jnp.dot(h, c[3:4, :].T, preferred_element_type=jnp.float32) + c[4, 0]


def critic_reference_f32(x, actions, raw, max_action):
    """Original PyTorch-module semantics, full f32."""
    (w1, b1), (w2, b2), (w3, b3), (wq, bq) = raw
    xa = jnp.concatenate([x, actions / max_action], axis=1)
    h = jnp.maximum(xa @ w1 + b1, 0.0)
    h = jnp.maximum(h @ w2 + b2, 0.0)
    h = jnp.maximum(h @ w3 + b3, 0.0)
    return h @ wq + bq


if __name__ == "__main__":
    key = jax.random.PRNGKey(0)
    batch, obs_dim, act_dim = 8, 24, 8
    inp_dim = obs_dim + act_dim          # nn.Linear(inp_dim, 256)
    max_action = 2.0

    key, kx, ka = jax.random.split(key, 3)
    x = jax.random.normal(kx, (batch, obs_dim), jnp.float32)
    actions = jax.random.normal(ka, (batch, act_dim), jnp.float32)

    # PyTorch-style init: U(-1/sqrt(fan_in), 1/sqrt(fan_in)); weights stored (in, out).
    raw = []
    kp = key
    for fan_in, fan_out in [(inp_dim, HIDDEN), (HIDDEN, HIDDEN),
                            (HIDDEN, HIDDEN), (HIDDEN, 1)]:
        kp, kw, kb = jax.random.split(kp, 3)
        bound = fan_in ** -0.5
        w = jax.random.uniform(kw, (fan_in, fan_out), jnp.float32, -bound, bound)
        b = jax.random.uniform(kb, (fan_out,), jnp.float32, -bound, bound)
        raw.append((w, b))
    params = pack_critic_params(raw, obs_dim, max_action)

    q = critic_forward(x, actions, params)
    q = jax.block_until_ready(q)
    assert q.shape == (batch, 1)

    # Check 1: matches the same bf16-weight arithmetic in plain JAX (tight).
    q_ref = critic_reference_packed(x, actions, params)
    assert jnp.allclose(q, q_ref, atol=5e-3, rtol=5e-3), "mismatch vs packed reference"

    # Check 2: faithful to the original f32 module semantics (loose; bf16 weights).
    q_f32 = critic_reference_f32(x, actions, raw, max_action)
    assert jnp.allclose(q, q_f32, atol=1e-1, rtol=1e-1), "mismatch vs f32 reference"

    print("KERNEL_OK")
</pallas_src>

<mosaic_0001>
module attributes {stable_mosaic.version = 11 : i64} {
  func.func @_critic_kernel(%arg0: i32, %arg1: memref<8x24xf32, #tpu.memory_space<vmem>>, %arg2: memref<8x8xf32, #tpu.memory_space<vmem>>, %arg3: memref<24x256xbf16, #tpu.memory_space<vmem>>, %arg4: memref<8x256xbf16, #tpu.memory_space<vmem>>, %arg5: memref<256x256xbf16, #tpu.memory_space<vmem>>, %arg6: memref<256x256xbf16, #tpu.memory_space<vmem>>, %arg7: memref<5x256xf32, #tpu.memory_space<vmem>>, %arg8: memref<1x1x8xf32, #tpu.memory_space<vmem>>) attributes {dimension_semantics = [#tpu.dimension_semantics<parallel>], iteration_bounds = array<i64: 1>, scalar_prefetch = 0 : i64, scratch_operands = 0 : i64, tpu.core_type = #tpu.core_type<tc>, window_params = [{transform_indices = @transform_0, window_bounds = array<i64: 8, 24>}, {transform_indices = @transform_1, window_bounds = array<i64: 8, 8>}, {pipeline_mode = #tpu.pipeline_mode<synchronous>, transform_indices = @transform_2, window_bounds = array<i64: 24, 256>}, {pipeline_mode = #tpu.pipeline_mode<synchronous>, transform_indices = @transform_3, window_bounds = array<i64: 8, 256>}, {pipeline_mode = #tpu.pipeline_mode<synchronous>, transform_indices = @transform_4, window_bounds = array<i64: 256, 256>}, {pipeline_mode = #tpu.pipeline_mode<synchronous>, transform_indices = @transform_5, window_bounds = array<i64: 256, 256>}, {pipeline_mode = #tpu.pipeline_mode<synchronous>, transform_indices = @transform_6, window_bounds = array<i64: 5, 256>}, {transform_indices = @transform_7, window_bounds = array<i64: 1, 1, 8>}]} {
    %c0 = arith.constant 0 : index
    %c0_0 = arith.constant 0 : index
    %0 = vector.load %arg7[%c0, %c0_0] : memref<5x256xf32, #tpu.memory_space<vmem>>, vector<5x256xf32>
    %c0_1 = arith.constant 0 : index
    %c0_2 = arith.constant 0 : index
    %1 = vector.load %arg1[%c0_1, %c0_2] : memref<8x24xf32, #tpu.memory_space<vmem>>, vector<8x24xf32>
    %2 = arith.truncf %1 : vector<8x24xf32> to vector<8x24xbf16>
    %c0_3 = arith.constant 0 : index
    %c0_4 = arith.constant 0 : index
    %3 = vector.load %arg2[%c0_3, %c0_4] : memref<8x8xf32, #tpu.memory_space<vmem>>, vector<8x8xf32>
    %4 = arith.truncf %3 : vector<8x8xf32> to vector<8x8xbf16>
    %c0_5 = arith.constant 0 : index
    %c0_6 = arith.constant 0 : index
    %5 = vector.load %arg3[%c0_5, %c0_6] : memref<24x256xbf16, #tpu.memory_space<vmem>>, vector<24x256xbf16>
    %cst = arith.constant dense<0.000000e+00> : vector<8x256xf32>
    %6 = tpu.matmul %2, %5, %cst {dimension_numbers = #tpu.dot_dimension_numbers<[1], [0], [0], [1], [0, 0, 1, 1], [], []>} : vector<8x24xbf16>, vector<24x256xbf16>, vector<8x256xf32> -> vector<8x256xf32>
    %c0_7 = arith.constant 0 : index
    %c0_8 = arith.constant 0 : index
    %7 = vector.load %arg4[%c0_7, %c0_8] : memref<8x256xbf16, #tpu.memory_space<vmem>>, vector<8x256xbf16>
    %cst_9 = arith.constant dense<0.000000e+00> : vector<8x256xf32>
    %8 = tpu.matmul %4, %7, %cst_9 {dimension_numbers = #tpu.dot_dimension_numbers<[1], [0], [0], [1], [0, 0, 1, 1], [], []>} : vector<8x8xbf16>, vector<8x256xbf16>, vector<8x256xf32> -> vector<8x256xf32>
    %9 = arith.addf %6, %8 : vector<8x256xf32>
    %10 = vector.extract_strided_slice %0 {offsets = [0, 0], sizes = [1, 256], strides = [1, 1]} : vector<5x256xf32> to vector<1x256xf32>
    %11 = vector.broadcast %10 : vector<1x256xf32> to vector<8x256xf32>
    %12 = arith.addf %9, %11 : vector<8x256xf32>
    %cst_10 = arith.constant 0.000000e+00 : f32
    %13 = vector.broadcast %cst_10 : f32 to vector<8x256xf32>
    %14 = arith.maximumf %12, %13 : vector<8x256xf32>
    %15 = arith.truncf %14 : vector<8x256xf32> to vector<8x256xbf16>
    %c0_11 = arith.constant 0 : index
    %c0_12 = arith.constant 0 : index
    %16 = vector.load %arg5[%c0_11, %c0_12] : memref<256x256xbf16, #tpu.memory_space<vmem>>, vector<256x256xbf16>
    %cst_13 = arith.constant dense<0.000000e+00> : vector<8x256xf32>
    %17 = tpu.matmul %15, %16, %cst_13 {dimension_numbers = #tpu.dot_dimension_numbers<[1], [0], [0], [1], [0, 0, 1, 1], [], []>} : vector<8x256xbf16>, vector<256x256xbf16>, vector<8x256xf32> -> vector<8x256xf32>
    %18 = vector.extract_strided_slice %0 {offsets = [1, 0], sizes = [1, 256], strides = [1, 1]} : vector<5x256xf32> to vector<1x256xf32>
    %19 = vector.broadcast %18 : vector<1x256xf32> to vector<8x256xf32>
    %20 = arith.addf %17, %19 : vector<8x256xf32>
    %cst_14 = arith.constant 0.000000e+00 : f32
    %21 = vector.broadcast %cst_14 : f32 to vector<8x256xf32>
    %22 = arith.maximumf %20, %21 : vector<8x256xf32>
    %23 = arith.truncf %22 : vector<8x256xf32> to vector<8x256xbf16>
    %c0_15 = arith.constant 0 : index
    %c0_16 = arith.constant 0 : index
    %24 = vector.load %arg6[%c0_15, %c0_16] : memref<256x256xbf16, #tpu.memory_space<vmem>>, vector<256x256xbf16>
    %cst_17 = arith.constant dense<0.000000e+00> : vector<8x256xf32>
    %25 = tpu.matmul %23, %24, %cst_17 {dimension_numbers = #tpu.dot_dimension_numbers<[1], [0], [0], [1], [0, 0, 1, 1], [], []>} : vector<8x256xbf16>, vector<256x256xbf16>, vector<8x256xf32> -> vector<8x256xf32>
    %26 = vector.extract_strided_slice %0 {offsets = [2, 0], sizes = [1, 256], strides = [1, 1]} : vector<5x256xf32> to vector<1x256xf32>
    %27 = vector.broadcast %26 : vector<1x256xf32> to vector<8x256xf32>
    %28 = arith.addf %25, %27 : vector<8x256xf32>
    %cst_18 = arith.constant 0.000000e+00 : f32
    %29 = vector.broadcast %cst_18 : f32 to vector<8x256xf32>
    %30 = arith.maximumf %28, %29 : vector<8x256xf32>
    %31 = vector.extract_strided_slice %0 {offsets = [3, 0], sizes = [1, 256], strides = [1, 1]} : vector<5x256xf32> to vector<1x256xf32>
    %cst_19 = arith.constant dense<0.000000e+00> : vector<1x8xf32>
    %32 = tpu.matmul %31, %30, %cst_19 {dimension_numbers = #tpu.dot_dimension_numbers<[1], [1], [0], [0], [0, 0, 1, 0], [], []>} : vector<1x256xf32>, vector<8x256xf32>, vector<1x8xf32> -> vector<1x8xf32>
    %33 = vector.extract_strided_slice %0 {offsets = [4, 0], sizes = [1, 1], strides = [1, 1]} : vector<5x256xf32> to vector<1x1xf32>
    %34 = vector.broadcast %33 : vector<1x1xf32> to vector<1x8xf32>
    %35 = arith.addf %32, %34 : vector<1x8xf32>
    %36 = vector.shape_cast %35 : vector<1x8xf32> to vector<1x1x8xf32>
    %c0_20 = arith.constant 0 : index
    %c0_21 = arith.constant 0 : index
    %c0_22 = arith.constant 0 : index
    %37 = vector.load %arg8[%c0_20, %c0_21, %c0_22] : memref<1x1x8xf32, #tpu.memory_space<vmem>>, vector<1x1x8xf32>
    tpu.vector_store %arg8[%c0_20, %c0_21, %c0_22], %36 {strides = array<i32>} : memref<1x1x8xf32, #tpu.memory_space<vmem>>, vector<1x1x8xf32>,
    return
  }
  func.func @transform_0(%arg0: i32) -> (i32, i32) {
    %c0_i32 = arith.constant 0 : i32
    %c0_i32_0 = arith.constant 0 : i32
    return %arg0, %c0_i32 : i32, i32
  }
  func.func @transform_1(%arg0: i32) -> (i32, i32) {
    %c0_i32 = arith.constant 0 : i32
    %c0_i32_0 = arith.constant 0 : i32
    return %arg0, %c0_i32 : i32, i32
  }
  func.func @transform_2(%arg0: i32) -> (i32, i32) {
    %c0_i32 = arith.constant 0 : i32
    %c0_i32_0 = arith.constant 0 : i32
    %c0_i32_1 = arith.constant 0 : i32
    return %c0_i32, %c0_i32_0 : i32, i32
  }
  func.func @transform_3(%arg0: i32) -> (i32, i32) {
    %c0_i32 = arith.constant 0 : i32
    %c0_i32_0 = arith.constant 0 : i32
    %c0_i32_1 = arith.constant 0 : i32
    return %c0_i32, %c0_i32_0 : i32, i32
  }
  func.func @transform_4(%arg0: i32) -> (i32, i32) {
    %c0_i32 = arith.constant 0 : i32
    %c0_i32_0 = arith.constant 0 : i32
    %c0_i32_1 = arith.constant 0 : i32
    return %c0_i32, %c0_i32_0 : i32, i32
  }
  func.func @transform_5(%arg0: i32) -> (i32, i32) {
    %c0_i32 = arith.constant 0 : i32
    %c0_i32_0 = arith.constant 0 : i32
    %c0_i32_1 = arith.constant 0 : i32
    return %c0_i32, %c0_i32_0 : i32, i32
  }
  func.func @transform_6(%arg0: i32) -> (i32, i32) {
    %c0_i32 = arith.constant 0 : i32
    %c0_i32_0 = arith.constant 0 : i32
    %c0_i32_1 = arith.constant 0 : i32
    return %c0_i32, %c0_i32_0 : i32, i32
  }
  func.func @transform_7(%arg0: i32) -> (i32, i32, i32) {
    %c0_i32 = arith.constant 0 : i32
    %c0_i32_0 = arith.constant 0 : i32
    %c0_i32_1 = arith.constant 0 : i32
    return %arg0, %c0_i32, %c0_i32_0 : i32, i32, i32
  }
}

</mosaic_0001>

<bundles_post_ra>
// kernel: critic_forward.1
= control target key start
LH: loop header
LB: loop body
LE: loop exit
PB: predicated region body
PF: predicated region fallthrough
CT: control target
= control target key end

     0   :  { %12 = vsyncpa [#allocation3], 0  ;;  %s1453_s0 = inlined_call_operand.hbm [shape: f32[8,24], index: 0, kind: input, shape index: {}]   ;;  %s1454_s1 = inlined_call_operand.hbm [shape: f32[8,8], index: 1, kind: input, shape index: {}]   ;;  %s1455_s2 = inlined_call_operand.hbm [shape: bf16[24,256], index: 2, kind: input, shape index: {}]   ;;  %s1456_s3 = inlined_call_operand.hbm [shape: bf16[8,256], index: 3, kind: input, shape index: {}]   ;;  %s1457_s4 = inlined_call_operand.hbm [shape: bf16[256,256], index: 4, kind: input, shape index: {}]   ;;  %s1458_s5 = inlined_call_operand.hbm [shape: bf16[256,256], index: 5, kind: input, shape index: {}]   ;;  %s1459_s6 = inlined_call_operand.hbm [shape: f32[5,256], index: 6, kind: input, shape index: {}]   ;;  %s1460_s7 = inlined_call_operand.hbm [shape: f32[1,1,8], index: 7, kind: output, shape index: {}]  }
   0x1   :  { %13 = vsyncpa [#allocation6], 0 }
   0x2   :  { %14 = vsyncpa [#allocation9], 0 }
   0x3   :  { %15 = vsyncpa [#allocation12], 0  ;;  %s33_s26 = sshll.u32 %s1454_s1, 4  ;;  %s34_s26 = int_to_ptr.hbm [resolvable:$true] %s33_s26 }
   0x4   :  { %16 = vsyncpa [#allocation4], 0  ;;  %s1359_s27 = smov [#allocation5]   ;;  %s57_s8 = sshll.u32 %s1456_s3, 4  ;;  %s58_s8 = int_to_ptr.hbm [resolvable:$true] %s57_s8 }
   0x5   :  { %s35_s28 = sshll.u32 %s1359_s27, 4  ;;  %s1360_s9 = smov [#allocation8]   ;;  %s36_s28 = int_to_ptr.vmem [resolvable:$true] %s35_s28 }
   0x6   :  { %38 = dma.hbm_to_vmem [thread:$0]  %s34_s26, 128, %s36_s28, [#allocation6]  }
   0x7   :  { %s59_s10 = sshll.u32 %s1360_s9, 4  ;;  %s80_s13 = sshll.u32 %s1458_s5, 4  ;;  %s60_s10 = int_to_ptr.vmem [resolvable:$true] %s59_s10  ;;  %s81_s13 = int_to_ptr.hbm [resolvable:$true] %s80_s13 }
   0x8   :  { %62 = dma.hbm_to_vmem [thread:$0]  %s58_s8, 128, %s60_s10, [#allocation9]  }
   0x9   :  { %s1361_s1 = smov [#allocation11]   ;;  %s22_s17 = sshll.u32 %s1453_s0, 4  ;;  %s23_s17 = int_to_ptr.hbm [resolvable:$true] %s22_s17 }
   0xa   :  { %s82_s14 = sshll.u32 %s1361_s1, 4  ;;  %s1362_s18 = smov 128   ;;  %s83_s14 = int_to_ptr.vmem [resolvable:$true] %s82_s14 }
   0xb   :  { %s1363_s3 = smov 8   ;;  %s1364_s19 = smov [#allocation2]  }
   0xc   :  { %88 = dma.hbm_to_vmem [thread:$0]  %s81_s13, 4096, %s83_s14, [#allocation12], %s1362_s18, %s1362_s18, %s1363_s3  }
   0xd   :  { %s24_s20 = sshll.u32 %s1364_s19, 4  ;;  %s43_s23 = sshll.u32 %s1455_s2, 4  ;;  %s25_s20 = int_to_ptr.vmem [resolvable:$true] %s24_s20  ;;  %s44_s23 = int_to_ptr.hbm [resolvable:$true] %s43_s23 }
   0xe   :  { %27 = dma.hbm_to_vmem [thread:$0]  %s23_s17, 128, %s25_s20, [#allocation3]  }
   0xf   :  { %s67_s25 = sshll.u32 %s1457_s4, 4  ;;  %s1365_s26 = smov [#allocation7]   ;;  %s68_s25 = int_to_ptr.hbm [resolvable:$true] %s67_s25 }
  0x10   :  { %s45_s27 = sshll.u32 %s1365_s26, 4  ;;  %s1366_s0 = smov [#allocation10]   ;;  %s46_s27 = int_to_ptr.vmem [resolvable:$true] %s45_s27 }
  0x11   :  { %51 = dma.hbm_to_vmem [thread:$0]  %s44_s23, 384, %s46_s27, [#allocation6], %s1362_s18, %s1362_s18, %s1363_s3  }
  0x12   :  { %s69_s28 = sshll.u32 %s1366_s0, 4  ;;  %s94_s8 = sshll.u32 %s1459_s6, 4  ;;  %s70_s28 = int_to_ptr.vmem [resolvable:$true] %s69_s28  ;;  %s95_s8 = int_to_ptr.hbm [resolvable:$true] %s94_s8 }
  0x13   :  { %75 = dma.hbm_to_vmem [thread:$0]  %s68_s25, 4096, %s70_s28, [#allocation9], %s1362_s18, %s1362_s18, %s1363_s3  }
  0x14   :  { %s1367_s2 = smov [#allocation13]  }
  0x15   :  { %s96_s9 = sshll.u32 %s1367_s2, 4  ;;  %s97_s9 = int_to_ptr.vmem [resolvable:$true] %s96_s9 }
  0x16   :  { %99 = dma.hbm_to_vmem [thread:$0]  %s95_s8, 256, %s97_s9, [#allocation12]  }
  0x17   :  { %1349 = dma.done.wait [#allocation3], 128  }
  0x18   :  { %1350 = vsyncadd [#allocation3], 4294967168 }
  0x19   :  { %1351 = dma.done.wait [#allocation6], 512  }
  0x1a   :  { %1352 = vsyncadd [#allocation6], 4294966784 }
  0x1b   :  { %1353 = dma.done.wait [#allocation9], 4224  }
  0x1c   :  { %1354 = vsyncadd [#allocation9], 4294963072 }
  0x1d   :  { %1355 = dma.done.wait [#allocation12], 4352  }
  0x1e   :  { %1356 = vsyncadd [#allocation12], 4294962944  ;;  %v137_v0 = vld [vmem:[#allocation7 + $0x10] sm:$0xff]  ;;  %v138_v1 = vld [vmem:[#allocation8] sm:$0xff]  ;;  %vm148_vm0 = vcmask 1043456   ;;  %vm144_vm1 = vcmask 64512  }
  0x1f   :  { %v188_v2 = vunpack.c.l.b16 %v137_v0  ;;  %v189_v3 = vunpack.c.h.b16 %v137_v0  ;;  %v140_v4 = vunpack.c.l.b16 %v138_v1  ;;  %v141_v5 = vunpack.c.h.b16 %v138_v1  ;;  %v815_v6 = vld [vmem:[#allocation7] sm:$0xf]  ;;  %v1080_v7 = vld [vmem:[#allocation7 + $0x4] sm:$0xf0]  ;;  %v1079_v8 = vld [vmem:[#allocation7 + $0x4] sm:$0xf] }
  0x20   :  { %v817_v9 = vld [vmem:[#allocation7 + $0x8] sm:$0xf0]  ;;  %v133_v10 = vld [vmem:[#allocation5] sm:$0xff]  ;;  %v881_v11 = vld [vmem:[#allocation10 + $0x70] sm:$0xf]  ;;  %v816_v29 = vor.u32 %v1080_v7, %v815_v6  ;;  %vm196_vm2 = vcmask 195584  }
  0x21   :  { %v192_v12 = vpack.c.b16 %v188_v2, %v188_v2  ;;  %v193_v13 = vpack.c.b16 %v189_v3, %v189_v3  ;;  %v142_v14 = vpack.c.b16 %v140_v4, %v140_v4  ;;  %v143_v15 = vpack.c.b16 %v141_v5, %v141_v5  ;;  %v1096_v16 = vld [vmem:[#allocation10 + $0x74] sm:$0xf0]  ;;  %v945_v17 = vld [vmem:[#allocation10 + $0xf0] sm:$0xf]  ;;  %v1095_v21 = vld [vmem:[#allocation10 + $0x74] sm:$0xf] }
  0x22   :  { %v1112_v18 = vld [vmem:[#allocation10 + $0xf4] sm:$0xf0]  ;;  %v882_v19 = vor.u32 %v1096_v16, %v881_v11  ;;  %v883_v22 = vld [vmem:[#allocation10 + $0x78] sm:$0xf0]  ;;  %v1111_v23 = vld [vmem:[#allocation10 + $0xf4] sm:$0xf]  ;;  %v820_v30 = vor.u32 %v1079_v8, %v817_v9  ;;  %v134_v33 = vpack.c.bf16 %v133_v10, %v133_v10 }
  0x23   :  { %v946_v20 = vor.u32 %v1112_v18, %v945_v17  ;;  %v201_v24 = vsel %vm148_vm0, %v192_v12, 0  ;;  %v204_v25 = vsel %vm148_vm0, %v193_v13, 0  ;;  %v150_v26 = vsel %vm148_vm0, %v142_v14, 0  ;;  %v947_v28 = vld [vmem:[#allocation10 + $0xf8] sm:$0xf0]  ;;  %v131_v31 = vld [vmem:[#allocation2] sm:$0xff] }
  0x24   :  { %v153_v27 = vsel %vm148_vm0, %v143_v15, 0  ;;  %212 = vmatpush.bf16.msra.mxu2 %v201_v24  ;;  %225 = vmatpush.bf16.msra.mxu3 %v204_v25  ;;  %v873_v32 = vld [vmem:[#allocation10 + $0x60] sm:$0xf]  ;;  %v1094_v34 = vld [vmem:[#allocation10 + $0x64] sm:$0xf0]  ;;  %v886_v37 = vor.u32 %v1095_v21, %v883_v22  ;;  %v950_v38 = vor.u32 %v1111_v23, %v947_v28  ;;  %v132_v40 = vpack.c.bf16 %v131_v31, %v131_v31  ;;  %s1369_s4 = smov [#allocation14]  }
  0x25   :  { %162 = vmatpush.bf16.msra.mxu0 %v150_v26  ;;  %175 = vmatpush.bf16.msra.mxu1 %v153_v27  ;;  %v937_v35 = vld [vmem:[#allocation10 + $0xe0] sm:$0xf]  ;;  %v1110_v36 = vld [vmem:[#allocation10 + $0xe4] sm:$0xf0]  ;;  %v1093_v39 = vld [vmem:[#allocation10 + $0x64] sm:$0xf]  ;;  %v874_v44 = vor.u32 %v1094_v34, %v873_v32 }
  0x26   :  { %v875_v41 = vld [vmem:[#allocation10 + $0x68] sm:$0xf0]  ;;  %v1109_v42 = vld [vmem:[#allocation10 + $0xe4] sm:$0xf]  ;;  %v938_v45 = vor.u32 %v1110_v36, %v937_v35  ;;  %v865_v46 = vld [vmem:[#allocation10 + $0x50] sm:$0xf] }
  0x27   :  { %v939_v43 = vld [vmem:[#allocation10 + $0xe8] sm:$0xf0]  ;;  %v1092_v47 = vld [vmem:[#allocation10 + $0x54] sm:$0xf0]  ;;  %v929_v48 = vld [vmem:[#allocation10 + $0xd0] sm:$0xf]  ;;  %v878_v50 = vor.u32 %v1093_v39, %v875_v41 }
  0x28   :  { %213 = vmatpush.bf16.msra.mxu2 %v816_v29  ;;  %226 = vmatpush.bf16.msra.mxu3 %v820_v30  ;;  %v1108_v49 = vld [vmem:[#allocation10 + $0xd4] sm:$0xf0]  ;;  %v942_v51 = vor.u32 %v1109_v42, %v939_v43  ;;  %v1091_v52 = vld [vmem:[#allocation10 + $0x54] sm:$0xf]  ;;  %v867_v53 = vld [vmem:[#allocation10 + $0x58] sm:$0xf0]  ;;  %v866_v56 = vor.u32 %v1092_v47, %v865_v46 }
  0x29   :  { %434 = vmatpush.bf16.msrb.mxu0 %v882_v19  ;;  %447 = vmatpush.bf16.msrb.mxu1 %v946_v20  ;;  %v1107_v54 = vld [vmem:[#allocation10 + $0xd4] sm:$0xf]  ;;  %v931_v55 = vld [vmem:[#allocation10 + $0xd8] sm:$0xf0]  ;;  %v930_v57 = vor.u32 %v1108_v49, %v929_v48  ;;  %v857_v58 = vld [vmem:[#allocation10 + $0x40] sm:$0xf]  ;;  %v870_v62 = vor.u32 %v1091_v52, %v867_v53 }
  0x2a   :  { %811 = vmatmul.msk.bf16.vlgmr.msra.gmra.mxu0 %vm144_vm1, %v134_v33  ;;  %812 = vmatmul.msk.bf16.vlgmr.msra.gmra.mxu1 %vm144_vm1, %v134_v33  ;;  %v1090_v59 = vld [vmem:[#allocation10 + $0x44] sm:$0xf0]  ;;  %v921_v60 = vld [vmem:[#allocation10 + $0xc0] sm:$0xf]  ;;  %v934_v63 = vor.u32 %v1107_v54, %v931_v55  ;;  %v1089_v0 = vld [vmem:[#allocation10 + $0x44] sm:$0xf] }
  0x2b   :  { %821 = vmatmul.msk.bf16.vlgmr.msra.gmra.mxu2 %vm196_vm2, %v132_v40  ;;  %822 = vmatmul.msk.bf16.vlgmr.msra.gmra.mxu3 %vm196_vm2, %v132_v40  ;;  %v1106_v61 = vld [vmem:[#allocation10 + $0xc4] sm:$0xf0]  ;;  %v859_v1 = vld [vmem:[#allocation10 + $0x48] sm:$0xf0]  ;;  %v1105_v2 = vld [vmem:[#allocation10 + $0xc4] sm:$0xf]  ;;  %v858_v4 = vor.u32 %v1090_v59, %v857_v58 }
  0x2c   :  { %460 = vmatpush.bf16.msrb.mxu2 %v886_v37  ;;  %473 = vmatpush.bf16.msrb.mxu3 %v950_v38  ;;  %v923_v3 = vld [vmem:[#allocation10 + $0xc8] sm:$0xf0]  ;;  %v922_v5 = vor.u32 %v1106_v61, %v921_v60  ;;  %v862_v6 = vor.u32 %v1089_v0, %v859_v1  ;;  %v849_v8 = vld [vmem:[#allocation10 + $0x30] sm:$0xf]  ;;  %v1088_v9 = vld [vmem:[#allocation10 + $0x34] sm:$0xf0] }
  0x2d   :  { %435 = vmatpush.bf16.msrb.mxu0 %v874_v44  ;;  %448 = vmatpush.bf16.msrb.mxu1 %v938_v45  ;;  %v926_v7 = vor.u32 %v1105_v2, %v923_v3  ;;  %v913_v10 = vld [vmem:[#allocation10 + $0xb0] sm:$0xf]  ;;  %v850_v11 = vor.u32 %v1088_v9, %v849_v8  ;;  %v1104_v12 = vld [vmem:[#allocation10 + $0xb4] sm:$0xf0]  ;;  %v1087_v13 = vld [vmem:[#allocation10 + $0x34] sm:$0xf] }
  0x2e   :  { %v851_v14 = vld [vmem:[#allocation10 + $0x38] sm:$0xf0]  ;;  %v914_v15 = vor.u32 %v1104_v12, %v913_v10  ;;  %v1103_v17 = vld [vmem:[#allocation10 + $0xb4] sm:$0xf]  ;;  %v841_v19 = vld [vmem:[#allocation10 + $0x20] sm:$0xf] }
  0x2f   :  { %v854_v16 = vor.u32 %v1087_v13, %v851_v14  ;;  %v915_v18 = vld [vmem:[#allocation10 + $0xb8] sm:$0xf0]  ;;  %v1086_v21 = vld [vmem:[#allocation10 + $0x24] sm:$0xf0]  ;;  %v905_v22 = vld [vmem:[#allocation10 + $0xa0] sm:$0xf] }
  0x30   :  { %461 = vmatpush.bf16.msrb.mxu2 %v878_v50  ;;  %474 = vmatpush.bf16.msrb.mxu3 %v942_v51  ;;  %v918_v20 = vor.u32 %v1103_v17, %v915_v18  ;;  %v1102_v23 = vld [vmem:[#allocation10 + $0xa4] sm:$0xf0]  ;;  %v842_v24 = vor.u32 %v1086_v21, %v841_v19  ;;  %v1085_v26 = vld [vmem:[#allocation10 + $0x24] sm:$0xf]  ;;  %v843_v27 = vld [vmem:[#allocation10 + $0x28] sm:$0xf0] }
  0x31   :  { %436 = vmatpush.bf16.msrb.mxu0 %v866_v56  ;;  %449 = vmatpush.bf16.msrb.mxu1 %v930_v57  ;;  %v906_v25 = vor.u32 %v1102_v23, %v905_v22  ;;  %v1101_v28 = vld [vmem:[#allocation10 + $0xa4] sm:$0xf]  ;;  %v846_v29 = vor.u32 %v1085_v26, %v843_v27  ;;  %v907_v30 = vld [vmem:[#allocation10 + $0xa8] sm:$0xf0]  ;;  %v833_v32 = vld [vmem:[#allocation10 + $0x10] sm:$0xf] }
  0x32   :  { %v910_v31 = vor.u32 %v1101_v28, %v907_v30  ;;  %v1084_v33 = vld [vmem:[#allocation10 + $0x14] sm:$0xf0]  ;;  %v897_v34 = vld [vmem:[#allocation10 + $0x90] sm:$0xf]  ;;  %v1083_v37 = vld [vmem:[#allocation10 + $0x14] sm:$0xf] }
  0x33   :  { %v834_v35 = vor.u32 %v1084_v33, %v833_v32  ;;  %v1100_v36 = vld [vmem:[#allocation10 + $0x94] sm:$0xf0]  ;;  %v835_v39 = vld [vmem:[#allocation10 + $0x18] sm:$0xf0]  ;;  %v1099_v40 = vld [vmem:[#allocation10 + $0x94] sm:$0xf] }
  0x34   :  { %462 = vmatpush.bf16.msrb.mxu2 %v870_v62  ;;  %475 = vmatpush.bf16.msrb.mxu3 %v934_v63  ;;  %v898_v38 = vor.u32 %v1100_v36, %v897_v34  ;;  %v899_v41 = vld [vmem:[#allocation10 + $0x98] sm:$0xf0]  ;;  %v838_v42 = vor.u32 %v1083_v37, %v835_v39  ;;  %v825_v44 = vld [vmem:[#allocation10] sm:$0xf]  ;;  %v1082_v45 = vld [vmem:[#allocation10 + $0x4] sm:$0xf0] }
  0x35   :  { %437 = vmatpush.bf16.msrb.mxu0 %v858_v4  ;;  %450 = vmatpush.bf16.msrb.mxu1 %v922_v5  ;;  %v902_v43 = vor.u32 %v1099_v40, %v899_v41  ;;  %v889_v46 = vld [vmem:[#allocation10 + $0x80] sm:$0xf]  ;;  %v826_v47 = vor.u32 %v1082_v45, %v825_v44  ;;  %v1098_v48 = vld [vmem:[#allocation10 + $0x84] sm:$0xf0]  ;;  %v1081_v49 = vld [vmem:[#allocation10 + $0x4] sm:$0xf] }
  0x36   :  { %v827_v50 = vld [vmem:[#allocation10 + $0x8] sm:$0xf0]  ;;  %v890_v51 = vor.u32 %v1098_v48, %v889_v46  ;;  %v1097_v53 = vld [vmem:[#allocation10 + $0x84] sm:$0xf]  ;;  %v1009_v56 = vld [vmem:[#allocation11 + $0x70] sm:$0xf] }
  0x37   :  { %v830_v52 = vor.u32 %v1081_v49, %v827_v50  ;;  %v891_v54 = vld [vmem:[#allocation10 + $0x88] sm:$0xf0]  ;;  %v1128_v57 = vld [vmem:[#allocation11 + $0x74] sm:$0xf0]  ;;  %v1127_v58 = vld [vmem:[#allocation11 + $0x74] sm:$0xf] }
  0x38   :  { %463 = vmatpush.bf16.msrb.mxu2 %v862_v6  ;;  %476 = vmatpush.bf16.msrb.mxu3 %v926_v7  ;;  %v894_v55 = vor.u32 %v1097_v53, %v891_v54  ;;  %v1010_v59 = vor.u32 %v1128_v57, %v1009_v56  ;;  %v1011_v60 = vld [vmem:[#allocation11 + $0x78] sm:$0xf0]  ;;  %v1001_v61 = vld [vmem:[#allocation11 + $0x60] sm:$0xf]  ;;  %v1126_v62 = vld [vmem:[#allocation11 + $0x64] sm:$0xf0] }
  0x39   :  { %438 = vmatpush.bf16.msrb.mxu0 %v850_v11  ;;  %451 = vmatpush.bf16.msrb.mxu1 %v914_v15  ;;  %v1014_v63 = vor.u32 %v1127_v58, %v1011_v60  ;;  %v1125_v0 = vld [vmem:[#allocation11 + $0x64] sm:$0xf]  ;;  %v1003_v1 = vld [vmem:[#allocation11 + $0x68] sm:$0xf0]  ;;  %v1073_v2 = vld [vmem:[#allocation11 + $0xf0] sm:$0xf]  ;;  %v1002_v3 = vor.u32 %v1126_v62, %v1001_v61 }
  0x3a   :  { %v1144_v4 = vld [vmem:[#allocation11 + $0xf4] sm:$0xf0]  ;;  %v1143_v5 = vld [vmem:[#allocation11 + $0xf4] sm:$0xf]  ;;  %v1075_v6 = vld [vmem:[#allocation11 + $0xf8] sm:$0xf0]  ;;  %v1006_v7 = vor.u32 %v1125_v0, %v1003_v1 }
  0x3b   :  { %v1074_v8 = vor.u32 %v1144_v4, %v1073_v2  ;;  %v1078_v9 = vor.u32 %v1143_v5, %v1075_v6  ;;  %v993_v10 = vld [vmem:[#allocation11 + $0x50] sm:$0xf]  ;;  %v1124_v11 = vld [vmem:[#allocation11 + $0x54] sm:$0xf0]  ;;  %v1123_v12 = vld [vmem:[#allocation11 + $0x54] sm:$0xf] }
  0x3c   :  { %464 = vmatpush.bf16.msrb.mxu2 %v854_v16  ;;  %477 = vmatpush.bf16.msrb.mxu3 %v918_v20  ;;  %v995_v13 = vld [vmem:[#allocation11 + $0x58] sm:$0xf0]  ;;  %v1065_v14 = vld [vmem:[#allocation11 + $0xe0] sm:$0xf]  ;;  %v1142_v15 = vld [vmem:[#allocation11 + $0xe4] sm:$0xf0]  ;;  %v994_v19 = vor.u32 %v1124_v11, %v993_v10 }
  0x3d   :  { %439 = vmatpush.bf16.msrb.mxu0 %v842_v24  ;;  %452 = vmatpush.bf16.msrb.mxu1 %v906_v25  ;;  %v1066_v16 = vor.u32 %v1142_v15, %v1065_v14  ;;  %v1141_v17 = vld [vmem:[#allocation11 + $0xe4] sm:$0xf]  ;;  %v1067_v18 = vld [vmem:[#allocation11 + $0xe8] sm:$0xf0]  ;;  %v985_v21 = vld [vmem:[#allocation11 + $0x40] sm:$0xf]  ;;  %v998_v23 = vor.u32 %v1123_v12, %v995_v13 }
  0x3e   :  { %v1070_v20 = vor.u32 %v1141_v17, %v1067_v18  ;;  %v1122_v22 = vld [vmem:[#allocation11 + $0x44] sm:$0xf0]  ;;  %v1057_v24 = vld [vmem:[#allocation11 + $0xd0] sm:$0xf]  ;;  %v1140_v25 = vld [vmem:[#allocation11 + $0xd4] sm:$0xf0] }
  0x3f   :  { %v1139_v26 = vld [vmem:[#allocation11 + $0xd4] sm:$0xf]  ;;  %v1121_v27 = vld [vmem:[#allocation11 + $0x44] sm:$0xf]  ;;  %v987_v28 = vld [vmem:[#allocation11 + $0x48] sm:$0xf0]  ;;  %v1058_v30 = vor.u32 %v1140_v25, %v1057_v24  ;;  %v986_v33 = vor.u32 %v1122_v22, %v985_v21 }
  0x40   :  { %465 = vmatpush.bf16.msrb.mxu2 %v846_v29  ;;  %478 = vmatpush.bf16.msrb.mxu3 %v910_v31  ;;  %v1059_v29 = vld [vmem:[#allocation11 + $0xd8] sm:$0xf0]  ;;  %v1049_v32 = vld [vmem:[#allocation11 + $0xc0] sm:$0xf]  ;;  %v1138_v34 = vld [vmem:[#allocation11 + $0xc4] sm:$0xf0]  ;;  %v990_v37 = vor.u32 %v1121_v27, %v987_v28 }
  0x41   :  { %440 = vmatpush.bf16.msrb.mxu0 %v834_v35  ;;  %453 = vmatpush.bf16.msrb.mxu1 %v898_v38  ;;  %v1062_v31 = vor.u32 %v1139_v26, %v1059_v29  ;;  %v1137_v35 = vld [vmem:[#allocation11 + $0xc4] sm:$0xf]  ;;  %v1051_v36 = vld [vmem:[#allocation11 + $0xc8] sm:$0xf0]  ;;  %v977_v38 = vld [vmem:[#allocation11 + $0x30] sm:$0xf]  ;;  %v1050_v44 = vor.u32 %v1138_v34, %v1049_v32 }
  0x42   :  { %v1120_v39 = vld [vmem:[#allocation11 + $0x34] sm:$0xf0]  ;;  %v1119_v40 = vld [vmem:[#allocation11 + $0x34] sm:$0xf]  ;;  %v979_v41 = vld [vmem:[#allocation11 + $0x38] sm:$0xf0]  ;;  %v1054_v45 = vor.u32 %v1137_v35, %v1051_v36 }
  0x43   :  { %v978_v46 = vor.u32 %v1120_v39, %v977_v38  ;;  %v969_v48 = vld [vmem:[#allocation11 + $0x20] sm:$0xf]  ;;  %v1118_v49 = vld [vmem:[#allocation11 + $0x24] sm:$0xf0]  ;;  %v1117_v50 = vld [vmem:[#allocation11 + $0x24] sm:$0xf] }
  0x44   :  { %466 = vmatpush.bf16.msrb.mxu2 %v838_v42  ;;  %479 = vmatpush.bf16.msrb.mxu3 %v902_v43  ;;  %v1439_v53 = vld [vmem:[#allocation13 + $0x8] sm:$0x1f]  ;;  %v970_v54 = vor.u32 %v1118_v49, %v969_v48  ;;  %v1135_v10 = vld [vmem:[#allocation11 + $0xb4] sm:$0xf]  ;;  %v1043_v12 = vld [vmem:[#allocation11 + $0xb8] sm:$0xf0] }
  0x45   :  { %441 = vmatpush.bf16.msrb.mxu0 %v826_v47  ;;  %454 = vmatpush.bf16.msrb.mxu1 %v890_v51  ;;  %v982_v47 = vor.u32 %v1119_v40, %v979_v41  ;;  %v971_v51 = vld [vmem:[#allocation11 + $0x28] sm:$0xf0]  ;;  %v1046_v13 = vor.u32 %v1135_v10, %v1043_v12  ;;  %v961_v14 = vld [vmem:[#allocation11 + $0x10] sm:$0xf]  ;;  %v1116_v15 = vld [vmem:[#allocation11 + $0x14] sm:$0xf0] }
  0x46   :  { %v962_v17 = vor.u32 %v1116_v15, %v961_v14  ;;  %v963_v18 = vld [vmem:[#allocation11 + $0x18] sm:$0xf0]  ;;  %v1134_v21 = vld [vmem:[#allocation11 + $0xa4] sm:$0xf0]  ;;  %v1133_v22 = vld [vmem:[#allocation11 + $0xa4] sm:$0xf] }
  0x47   :  { %v1035_v24 = vld [vmem:[#allocation11 + $0xa8] sm:$0xf0]  ;;  %v953_v26 = vld [vmem:[#allocation11] sm:$0xf]  ;;  %v1114_v27 = vld [vmem:[#allocation11 + $0x4] sm:$0xf0] }
  0x48   :  { %467 = vmatpush.bf16.msrb.mxu2 %v830_v52  ;;  %480 = vmatpush.bf16.msrb.mxu3 %v894_v55  ;;  %v1437_v52 = vld [vmem:[#allocation13] sm:$0x1f]  ;;  %v974_v55 = vor.u32 %v1117_v50, %v971_v51  ;;  %v1038_v25 = vor.u32 %v1133_v22, %v1035_v24  ;;  %v954_v29 = vor.u32 %v1114_v27, %v953_v26  ;;  %v1025_v32 = vld [vmem:[#allocation11 + $0x90] sm:$0xf]  ;;  %v1131_v35 = vld [vmem:[#allocation11 + $0x94] sm:$0xf] }
  0x49   :  { %684 = vmatpush.bf16.msra.mxu0 %v1010_v59  ;;  %697 = vmatpush.bf16.msra.mxu1 %v1074_v8  ;;  %v232_v56 = vperm.slane %v1437_v52, 0  ;;  %v233_v59 = vperm.slane %v1439_v53, 0  ;;  %v1041_v8 = vld [vmem:[#allocation11 + $0xb0] sm:$0xf]  ;;  %v1113_v28 = vld [vmem:[#allocation11 + $0x4] sm:$0xf] }
  0x4a   :  { %v1027_v36 = vld [vmem:[#allocation11 + $0x98] sm:$0xf0]  ;;  %v1017_v38 = vld [vmem:[#allocation11 + $0x80] sm:$0xf]  ;;  %v1130_v39 = vld [vmem:[#allocation11 + $0x84] sm:$0xf0] }
  0x4b   :  { %v1129_v40 = vld [vmem:[#allocation11 + $0x84] sm:$0xf]  ;;  %v1018_v41 = vor.u32 %v1130_v39, %v1017_v38  ;;  %v273_v49 = vperm.slane %v1439_v53, 1  ;;  %v743_v10 = vrot.slane %v1437_v52, 3  ;;  %s796_s6 = sshll.u32 %s1369_s4, 4  ;;  %s798_s12 = sshll.u32 %s1460_s7, 4  ;;  %s797_s6 = int_to_ptr.vmem [resolvable:$true] %s796_s6  ;;  %s799_s12 = int_to_ptr.hbm [resolvable:$true] %s798_s12 }
  0x4c   :  { %710 = vmatpush.bf16.msra.mxu2 %v1014_v63  ;;  %723 = vmatpush.bf16.msra.mxu3 %v1078_v9  ;;  %v1136_v9 = vld [vmem:[#allocation11 + $0xb4] sm:$0xf0]  ;;  %vm789_vm3 = vcmask 57344  }
  0x4d   :  { %685 = vmatpush.bf16.msra.mxu0 %v1002_v3  ;;  %698 = vmatpush.bf16.msra.mxu1 %v1066_v16  ;;  %v1042_v11 = vor.u32 %v1136_v9, %v1041_v8  ;;  %v1115_v16 = vld [vmem:[#allocation11 + $0x14] sm:$0xf] }
  0x50   :  { %711 = vmatpush.bf16.msra.mxu2 %v1006_v7  ;;  %724 = vmatpush.bf16.msra.mxu3 %v1070_v20  ;;  %v1033_v20 = vld [vmem:[#allocation11 + $0xa0] sm:$0xf] }
  0x51   :  { %686 = vmatpush.bf16.msra.mxu0 %v994_v19  ;;  %699 = vmatpush.bf16.msra.mxu1 %v1058_v30  ;;  %v966_v19 = vor.u32 %v1115_v16, %v963_v18  ;;  %v955_v30 = vld [vmem:[#allocation11 + $0x8] sm:$0xf0] }
  0x54   :  { %712 = vmatpush.bf16.msra.mxu2 %v998_v23  ;;  %725 = vmatpush.bf16.msra.mxu3 %v1062_v31  ;;  %v1034_v23 = vor.u32 %v1134_v21, %v1033_v20  ;;  %v958_v31 = vor.u32 %v1113_v28, %v955_v30 }
  0x55   :  { %687 = vmatpush.bf16.msra.mxu0 %v986_v33  ;;  %700 = vmatpush.bf16.msra.mxu1 %v1050_v44  ;;  %v1132_v33 = vld [vmem:[#allocation11 + $0x94] sm:$0xf0]  ;;  %v272_v44 = vperm.slane %v1437_v52, 1 }
  0x56   :  { %v1026_v34 = vor.u32 %v1132_v33, %v1025_v32 }
  0x58   :  { %713 = vmatpush.bf16.msra.mxu2 %v990_v37  ;;  %726 = vmatpush.bf16.msra.mxu3 %v1054_v45  ;;  %v1030_v37 = vor.u32 %v1131_v35, %v1027_v36 }
  0x59   :  { %688 = vmatpush.bf16.msra.mxu0 %v978_v46  ;;  %701 = vmatpush.bf16.msra.mxu1 %v1042_v11 }
  0x5c   :  { %714 = vmatpush.bf16.msra.mxu2 %v982_v47  ;;  %727 = vmatpush.bf16.msra.mxu3 %v1046_v13 }
  0x5d   :  { %689 = vmatpush.bf16.msra.mxu0 %v970_v54  ;;  %702 = vmatpush.bf16.msra.mxu1 %v1034_v23 }
  0x60   :  { %715 = vmatpush.bf16.msra.mxu2 %v974_v55  ;;  %728 = vmatpush.bf16.msra.mxu3 %v1038_v25 }
  0x61   :  { %690 = vmatpush.bf16.msra.mxu0 %v962_v17  ;;  %703 = vmatpush.bf16.msra.mxu1 %v1026_v34  ;;  %v744_v17 = vrot.slane %v1439_v53, 3 }
  0x64   :  { %716 = vmatpush.bf16.msra.mxu2 %v966_v19  ;;  %729 = vmatpush.bf16.msra.mxu3 %v1030_v37 }
  0x65   :  { %691 = vmatpush.bf16.msra.mxu0 %v954_v29  ;;  %704 = vmatpush.bf16.msra.mxu1 %v1018_v41 }
  0x68   :  { %717 = vmatpush.bf16.msra.mxu2 %v958_v31 }
  0xa7   :  { %v164_v42 = vpop.f32.mrf.mxu0  ;;  %v177_v43 = vpop.f32.mrf.mxu1 }
  0xae   :  { %v215_v58 = vpop.f32.mrf.mxu2  ;;  %v228_v61 = vpop.f32.mrf.mxu3 }
  0xaf   :  { %v166_v57 = vpop.f32.mrf.mxu0  ;;  %v216_v60 = vadd.f32 %v215_v58, %v164_v42  ;;  %v179_v62 = vpop.f32.mrf.mxu1  ;;  %v229_v63 = vadd.f32 %v228_v61, %v177_v43  ;;  %v1019_v42 = vld [vmem:[#allocation11 + $0x88] sm:$0xf0] }
  0xb0   :  { %v1022_v43 = vor.u32 %v1129_v40, %v1019_v42 }
  0xb1   :  { %v234_v0 = vadd.f32 %v232_v56, %v216_v60  ;;  %v235_v1 = vadd.f32 %v233_v59, %v229_v63 }
  0xb2   :  { %730 = vmatpush.bf16.msra.mxu3 %v1022_v43 }
  0xb3   :  { %v236_v2 = vmax.f32 %v234_v0, 0.0  ;;  %v237_v3 = vmax.f32 %v235_v1, 0.0  ;;  %v1368_v0 = vmov 0  }
  0xb4   :  { %1156 = vset.pattern.permute.xlu0 %v1368_v0 }
  0xb5   :  { %v238_v4 = vpack.c.bf16 %v236_v2, %v236_v2  ;;  %v239_v5 = vpack.c.bf16 %v237_v3, %v237_v3  ;;  %740 = vperm.xlu0 %1156, %v1437_v52   ;;  %v522_v2 = vperm.slane %v1437_v52, 2 }
  0xb6   :  { %v217_v6 = vpop.f32.mrf.mxu2  ;;  %v230_v7 = vpop.f32.mrf.mxu3 }
  0xb7   :  { %442 = vmatmul.bf16.vlgmr.msrb.gmra.mxu0 %v238_v4  ;;  %468 = vmatmul.bf16.vlgmr.msrb.gmra.mxu2 %v238_v4  ;;  %v523_v7 = vperm.slane %v1439_v53, 2 }
  0xb8   :  { %455 = vmatmul.bf16.vlgmr.msrb.gmra.mxu1 %v239_v5  ;;  %481 = vmatmul.bf16.vlgmr.msrb.gmra.mxu3 %v239_v5 }
 0x127   :  { %v741_v19 = vpop.permute.xlu0 %740 }
 0x128   :  { %v747_v20 = vrot.slane %v741_v19, 4 }
 0x134   :  { %v443_v45 = vpop.f32.mrf.mxu0 }
 0x135   :  { %v444_v46 = vadd.f32 %v443_v45, %v272_v44  ;;  %v456_v47 = vpop.f32.mrf.mxu1 }
 0x137   :  { %v457_v48 = vadd.f32 %v456_v47, %v444_v46 }
 0x139   :  { %v486_v50 = vmax.f32 %v457_v48, 0.0 }
 0x13a   :  { %v469_v51 = vpop.f32.mrf.mxu2 }
 0x13b   :  { %v488_v54 = vpack.c.bf16 %v486_v50, %v486_v50  ;;  %v470_v55 = vadd.f32 %v469_v51, %v273_v49  ;;  %v482_v56 = vpop.f32.mrf.mxu3 }
 0x13c   :  { %v445_v57 = vpop.f32.mrf.mxu0 }
 0x13d   :  { %v483_v58 = vadd.f32 %v482_v56, %v470_v55  ;;  %v458_v59 = vpop.f32.mrf.mxu1  ;;  %692 = vmatmul.bf16.vlgmr.msra.gmra.mxu0 %v488_v54  ;;  %718 = vmatmul.bf16.vlgmr.msra.gmra.mxu2 %v488_v54 }
 0x13f   :  { %v487_v60 = vmax.f32 %v483_v58, 0.0 }
 0x141   :  { %v489_v61 = vpack.c.bf16 %v487_v60, %v487_v60 }
 0x142   :  { %v471_v62 = vpop.f32.mrf.mxu2 }
 0x143   :  { %v484_v63 = vpop.f32.mrf.mxu3  ;;  %705 = vmatmul.bf16.vlgmr.msra.gmra.mxu1 %v489_v61  ;;  %731 = vmatmul.bf16.vlgmr.msra.gmra.mxu3 %v489_v61 }
 0x1ba   :  { %v693_v1 = vpop.f32.mrf.mxu0 }
 0x1bb   :  { %v694_v3 = vadd.f32 %v693_v1, %v522_v2 }
 0x1c0   :  { %v706_v4 = vpop.f32.mrf.mxu1  ;;  %v719_v5 = vpop.f32.mrf.mxu2 }
 0x1c1   :  { %v707_v6 = vadd.f32 %v706_v4, %v694_v3  ;;  %v720_v11 = vadd.f32 %v719_v5, %v523_v7 }
 0x1c2   :  { %v695_v8 = vpop.f32.mrf.mxu0 }
 0x1c3   :  { %v736_v9 = vmax.f32 %v707_v6, 0.0 }
 0x1c5   :  { %764 = vmatpush.xpose.msrb.mxu0 %v736_v9 }
 0x1c6   :  { %v732_v12 = vpop.f32.mrf.mxu3 }
 0x1c7   :  { %v733_v13 = vadd.f32 %v732_v12, %v720_v11 }
 0x1c8   :  { %v708_v14 = vpop.f32.mrf.mxu1  ;;  %v721_v15 = vpop.f32.mrf.mxu2  ;;  %765 = vmatmul.f32.vlgmr.msrb.gmra.mxu0 %v743_v10 }
 0x1c9   :  { %v737_v16 = vmax.f32 %v733_v13, 0.0 }
 0x1cb   :  { %784 = vmatpush.xpose.msrb.mxu1 %v737_v16 }
 0x1ce   :  { %v734_v18 = vpop.f32.mrf.mxu3  ;;  %785 = vmatmul.f32.vlgmr.msrb.gmra.mxu1 %v744_v17 }
 0x245   :  { %v766_v21 = vpop.f32.mrf.mxu0 }
 0x246   :  { %v767_v22 = vadd.f32 %v766_v21, %v747_v20 }
 0x24b   :  { %v786_v52 = vpop.f32.mrf.mxu1 }
 0x24c   :  { %v787_v23 = vadd.f32 %v786_v52, %v767_v22 }
 0x24e   :  { %790 = vst.msk [vmem:[#allocation14] sm:$0x1] %vm789_vm3, %v787_v23 }
 0x24f   :  { %801 = dma.vmem_to_hbm [thread:$0]  %s797_s6, 16, %s799_s12, [#allocation4]  }
 0x250   :  { %1357 = dma.done.wait [#allocation4], 16  }
 0x251   :  { %1358 = vsyncadd [#allocation4], 4294967280 }
 0x252   :  { %806 = vsyncpa [#allocation3], 1 }
 0x253   :  { %807 = vsyncpa [#allocation6], 1 }
 0x254   :  { %808 = vsyncpa [#allocation9], 1 }
 0x255   :  { %809 = vsyncpa [#allocation12], 1 }
 0x256   :  { %810 = vsyncpa [#allocation4], 1 }

</bundles_post_ra>
